<compile_context>
chip_gen: v7x
topology: tpu7x:2x2x1
jax: 0.10.0
libtpu: 0.0.40
codegen_flags: <defaults>
</compile_context>

<pallas_src>
import functools

import jax
import jax.numpy as jnp
from jax.experimental import pallas as pl
from jax.experimental.pallas import tpu as pltpu


def _round_up(x, m):
    return ((x + m - 1) // m) * m


def _mlp_kernel(n_layers, matmul_dtype, *refs):
    """refs = (x_ref, w0, b0, w1, b1, ..., w_{L-1}, b_{L-1}, out_ref).

    All layers except the final one are followed by tanh, matching DNN1.forward.
    Weights arrive pre-cast to the MXU input dtype, biases pre-cast to f32 (done once in the
    wrapper); the only per-step cast left is the activation cast feeding the MXU.
    """
    x_ref = refs[0]
    out_ref = refs[-1]
    params = refs[1:-1]

    h = x_ref[...]
    if matmul_dtype is None and h.dtype != jnp.float32:
        h = h.astype(jnp.float32)
    for i in range(n_layers):
        w = params[2 * i][...]          # VMEM-resident, already in matmul dtype
        b = params[2 * i + 1][...]      # (1, out_dim) f32, broadcasts over the row tile
        h_in = h.astype(matmul_dtype) if matmul_dtype is not None else h
        h = jnp.dot(h_in, w, preferred_element_type=jnp.float32) + b   # MXU + VPU
        if i < n_layers - 1:
            h = jnp.tanh(h)             # EUP, f32
    out_ref[...] = h.astype(out_ref.dtype)


def dnn1_forward(x, params, *, block_rows=None, matmul_dtype=jnp.bfloat16):
    """params = [w0, b0, w1, b1, ...] with wi: (in, out) pre-transposed, bi: (1, out)."""
    n_layers = len(params) // 2
    out_dim = params[-2].shape[1]
    batch, in_dim = x.shape

    # Pre-cast parameters once in the wrapper; the kernel reuses the VMEM-resident copies
    # on every grid step (constant-index BlockSpecs below).
    kparams = []
    for i in range(n_layers):
        w, b = params[2 * i], params[2 * i + 1]
        if matmul_dtype is not None:
            w = w.astype(matmul_dtype)
        elif w.dtype != jnp.float32:
            w = w.astype(jnp.float32)
        kparams.append(w)
        kparams.append(b.astype(jnp.float32))

    # --- Per-generation tiling: v5e/v6e have 128 MiB physical VMEM, v7x has 64 MiB per TC.
    try:
        vmem_bytes = getattr(pltpu.get_tpu_info(), "vmem_capacity_bytes", 64 << 20)
    except Exception:  # interpret mode / older runtimes
        vmem_bytes = 64 << 20
    big_vmem = vmem_bytes >= (96 << 20)
    vmem_limit = (64 << 20) if big_vmem else (48 << 20)

    rows8 = _round_up(batch, 8)
    if block_rows is None:
        block_rows = 8192 if big_vmem else 4096
        tm = min(block_rows, rows8)
        # Guarantee >=2 grid steps when there is enough work so the "parallel" batch axis
        # actually shards across both TensorCores on v7x.
        if rows8 >= 16:
            tm = min(tm, _round_up((rows8 + 1) // 2, 8))
    else:
        tm = min(block_rows, rows8)
    tm = _round_up(tm, 8)

    padded_batch = _round_up(batch, tm)
    if padded_batch != batch:
        x = jnp.pad(x, ((0, padded_batch - batch), (0, 0)))
    grid = (padded_batch // tm,)

    # x / out tiles walk the batch; weights & biases use a constant block index so they are
    # DMA'd once and stay resident in VMEM for the whole grid.
    in_specs = [pl.BlockSpec((tm, in_dim), lambda i: (i, 0))]
    in_specs += [pl.BlockSpec(p.shape, lambda i: (0, 0)) for p in kparams]
    # Unpadded, per-row-minimal output: (tm, out_dim) block (out_dim equals the full array dim).
    out_specs = pl.BlockSpec((tm, out_dim), lambda i: (i, 0))

    # Advisory cost estimate for XLA scheduling around the custom call (unpadded output).
    dims = [kparams[0].shape[0]] + [w.shape[1] for w in kparams[0::2]]
    flops = 2 * padded_batch * sum(dims[i] * dims[i + 1] for i in range(n_layers))
    transcendentals = padded_batch * sum(dims[1:n_layers])
    bytes_accessed = (padded_batch * in_dim * x.dtype.itemsize
                      + sum(p.size * p.dtype.itemsize for p in kparams)
                      + padded_batch * out_dim * x.dtype.itemsize)

    out = pl.pallas_call(
        functools.partial(_mlp_kernel, n_layers, matmul_dtype),
        out_shape=jax.ShapeDtypeStruct((padded_batch, out_dim), x.dtype),
        grid=grid,
        in_specs=in_specs,
        out_specs=out_specs,
        compiler_params=pltpu.CompilerParams(
            dimension_semantics=("parallel",),   # independent batch tiles -> both TCs on v7x
            vmem_limit_bytes=vmem_limit),
        cost_estimate=pl.CostEstimate(
            flops=flops,
            transcendentals=transcendentals,
            bytes_accessed=bytes_accessed),
    )(x, *kparams)

    return out[:batch]


def init_dnn1_params(key, input_size, hidden_size, output_size, hidden_num,
                     dtype=jnp.float32):
    """Deterministic init mirroring torch.nn.Linear default (uniform +-1/sqrt(fan_in)).

    Layer sizes: input->hidden, then (hidden_num-1) x hidden->hidden, then hidden->output.
    """
    dims = [input_size] + [hidden_size] * hidden_num + [output_size]
    params = []
    for i in range(len(dims) - 1):
        fan_in, fan_out = dims[i], dims[i + 1]
        key, kw, kb = jax.random.split(key, 3)
        bound = 1.0 / (fan_in ** 0.5)
        w = jax.random.uniform(kw, (fan_in, fan_out), dtype, -bound, bound)
        b = jax.random.uniform(kb, (1, fan_out), dtype, -bound, bound)
        params.extend([w, b])
    return params


def dnn1_reference(x, params, matmul_dtype=None):
    """Pure-JAX reference; optionally emulates the kernel's bf16 MXU inputs (f32 accumulate)."""
    n_layers = len(params) // 2
    h = x.astype(jnp.float32)
    for i in range(n_layers):
        w = params[2 * i]
        b = params[2 * i + 1].astype(jnp.float32)
        if matmul_dtype is not None:
            h_in, w = h.astype(matmul_dtype), w.astype(matmul_dtype)
        else:
            h_in = h
        h = jnp.dot(h_in, w, preferred_element_type=jnp.float32) + b
        if i < n_layers - 1:
            h = jnp.tanh(h)
    return h


if __name__ == "__main__":
    # Small shapes consistent with the module: a hyperelasticity PINN taking
    # 3 coordinates -> 32 hidden units, 3 hidden layers -> 1 output.
    input_size, hidden_size, output_size, hidden_num = 3, 32, 1, 3

    key = jax.random.PRNGKey(0)
    key, kx1, kx2, kx3 = jax.random.split(key, 4)
    params = init_dnn1_params(key, input_size, hidden_size, output_size, hidden_num)

    # Case 1: tiny batch, full-f32 path (single grid step), tight tolerance.
    batch = 8
    x1 = jax.random.normal(kx1, (batch, input_size), jnp.float32)
    y1 = jax.block_until_ready(dnn1_forward(x1, params, matmul_dtype=None))
    y1_ref = dnn1_reference(x1, params)
    assert y1.shape == (batch, output_size)
    assert jnp.allclose(y1, y1_ref, atol=1e-5, rtol=1e-5)

    # Case 2: ragged batch + explicit small tile to exercise the multi-step grid and batch
    # padding path (3 tiles of 128 rows, last partially padded), default bf16 MXU inputs.
    batch2 = 300
    x2 = jax.random.normal(kx2, (batch2, input_size), jnp.float32)
    y2 = jax.block_until_ready(dnn1_forward(x2, params, block_rows=128))
    y2_ref = dnn1_reference(x2, params, matmul_dtype=jnp.bfloat16)
    assert y2.shape == (batch2, output_size)
    assert jnp.allclose(y2, y2_ref, atol=2e-3, rtol=2e-3)

    # Case 3: default tile selection with the ">=2 grid steps" cap (tm=1024, grid=(2,)).
    batch3 = 2048
    x3 = jax.random.normal(kx3, (batch3, input_size), jnp.float32)
    y3 = jax.block_until_ready(dnn1_forward(x3, params))
    y3_ref = dnn1_reference(x3, params, matmul_dtype=jnp.bfloat16)
    assert y3.shape == (batch3, output_size)
    assert jnp.allclose(y3, y3_ref, atol=2e-3, rtol=2e-3)

    print("KERNEL_OK")
</pallas_src>

<mosaic_0001>
module attributes {stable_mosaic.version = 11 : i64} {
  func.func @_mlp_kernel(%arg0: i32, %arg1: memref<8x3xf32, #tpu.memory_space<vmem>>, %arg2: memref<3x32xf32, #tpu.memory_space<vmem>>, %arg3: memref<1x32xf32, #tpu.memory_space<vmem>>, %arg4: memref<32x32xf32, #tpu.memory_space<vmem>>, %arg5: memref<1x32xf32, #tpu.memory_space<vmem>>, %arg6: memref<32x32xf32, #tpu.memory_space<vmem>>, %arg7: memref<1x32xf32, #tpu.memory_space<vmem>>, %arg8: memref<32x1xf32, #tpu.memory_space<vmem>>, %arg9: memref<1x1xf32, #tpu.memory_space<vmem>>, %arg10: memref<8x1xf32, #tpu.memory_space<vmem>>) attributes {dimension_semantics = [#tpu.dimension_semantics<parallel>], iteration_bounds = array<i64: 1>, scalar_prefetch = 0 : i64, scratch_operands = 0 : i64, tpu.core_type = #tpu.core_type<tc>, window_params = [{transform_indices = @transform_0, window_bounds = array<i64: 8, 3>}, {pipeline_mode = #tpu.pipeline_mode<synchronous>, transform_indices = @transform_1, window_bounds = array<i64: 3, 32>}, {pipeline_mode = #tpu.pipeline_mode<synchronous>, transform_indices = @transform_2, window_bounds = array<i64: 1, 32>}, {pipeline_mode = #tpu.pipeline_mode<synchronous>, transform_indices = @transform_3, window_bounds = array<i64: 32, 32>}, {pipeline_mode = #tpu.pipeline_mode<synchronous>, transform_indices = @transform_4, window_bounds = array<i64: 1, 32>}, {pipeline_mode = #tpu.pipeline_mode<synchronous>, transform_indices = @transform_5, window_bounds = array<i64: 32, 32>}, {pipeline_mode = #tpu.pipeline_mode<synchronous>, transform_indices = @transform_6, window_bounds = array<i64: 1, 32>}, {pipeline_mode = #tpu.pipeline_mode<synchronous>, transform_indices = @transform_7, window_bounds = array<i64: 32, 1>}, {pipeline_mode = #tpu.pipeline_mode<synchronous>, transform_indices = @transform_8, window_bounds = array<i64: 1, 1>}, {transform_indices = @transform_9, window_bounds = array<i64: 8, 1>}]} {
    %c0 = arith.constant 0 : index
    %c0_0 = arith.constant 0 : index
    %0 = vector.load %arg1[%c0, %c0_0] : memref<8x3xf32, #tpu.memory_space<vmem>>, vector<8x3xf32>
    %c0_1 = arith.constant 0 : index
    %c0_2 = arith.constant 0 : index
    %1 = vector.load %arg2[%c0_1, %c0_2] : memref<3x32xf32, #tpu.memory_space<vmem>>, vector<3x32xf32>
    %c0_3 = arith.constant 0 : index
    %c0_4 = arith.constant 0 : index
    %2 = vector.load %arg3[%c0_3, %c0_4] : memref<1x32xf32, #tpu.memory_space<vmem>>, vector<1x32xf32>
    %cst = arith.constant dense<0.000000e+00> : vector<8x32xf32>
    %3 = tpu.matmul %0, %1, %cst {dimension_numbers = #tpu.dot_dimension_numbers<[1], [0], [0], [1], [0, 0, 1, 1], [], []>} : vector<8x3xf32>, vector<3x32xf32>, vector<8x32xf32> -> vector<8x32xf32>
    %4 = vector.broadcast %2 : vector<1x32xf32> to vector<8x32xf32>
    %5 = arith.addf %3, %4 : vector<8x32xf32>
    %6 = math.tanh %5 : vector<8x32xf32>
    %c0_5 = arith.constant 0 : index
    %c0_6 = arith.constant 0 : index
    %7 = vector.load %arg4[%c0_5, %c0_6] : memref<32x32xf32, #tpu.memory_space<vmem>>, vector<32x32xf32>
    %c0_7 = arith.constant 0 : index
    %c0_8 = arith.constant 0 : index
    %8 = vector.load %arg5[%c0_7, %c0_8] : memref<1x32xf32, #tpu.memory_space<vmem>>, vector<1x32xf32>
    %cst_9 = arith.constant dense<0.000000e+00> : vector<8x32xf32>
    %9 = tpu.matmul %6, %7, %cst_9 {dimension_numbers = #tpu.dot_dimension_numbers<[1], [0], [0], [1], [0, 0, 1, 1], [], []>} : vector<8x32xf32>, vector<32x32xf32>, vector<8x32xf32> -> vector<8x32xf32>
    %10 = vector.broadcast %8 : vector<1x32xf32> to vector<8x32xf32>
    %11 = arith.addf %9, %10 : vector<8x32xf32>
    %12 = math.tanh %11 : vector<8x32xf32>
    %c0_10 = arith.constant 0 : index
    %c0_11 = arith.constant 0 : index
    %13 = vector.load %arg6[%c0_10, %c0_11] : memref<32x32xf32, #tpu.memory_space<vmem>>, vector<32x32xf32>
    %c0_12 = arith.constant 0 : index
    %c0_13 = arith.constant 0 : index
    %14 = vector.load %arg7[%c0_12, %c0_13] : memref<1x32xf32, #tpu.memory_space<vmem>>, vector<1x32xf32>
    %cst_14 = arith.constant dense<0.000000e+00> : vector<8x32xf32>
    %15 = tpu.matmul %12, %13, %cst_14 {dimension_numbers = #tpu.dot_dimension_numbers<[1], [0], [0], [1], [0, 0, 1, 1], [], []>} : vector<8x32xf32>, vector<32x32xf32>, vector<8x32xf32> -> vector<8x32xf32>
    %16 = vector.broadcast %14 : vector<1x32xf32> to vector<8x32xf32>
    %17 = arith.addf %15, %16 : vector<8x32xf32>
    %18 = math.tanh %17 : vector<8x32xf32>
    %c0_15 = arith.constant 0 : index
    %c0_16 = arith.constant 0 : index
    %19 = vector.load %arg8[%c0_15, %c0_16] : memref<32x1xf32, #tpu.memory_space<vmem>>, vector<32x1xf32>
    %c0_17 = arith.constant 0 : index
    %c0_18 = arith.constant 0 : index
    %20 = vector.load %arg9[%c0_17, %c0_18] : memref<1x1xf32, #tpu.memory_space<vmem>>, vector<1x1xf32>
    %cst_19 = arith.constant dense<0.000000e+00> : vector<8x1xf32>
    %21 = tpu.matmul %18, %19, %cst_19 {dimension_numbers = #tpu.dot_dimension_numbers<[1], [0], [0], [1], [0, 0, 1, 1], [], []>} : vector<8x32xf32>, vector<32x1xf32>, vector<8x1xf32> -> vector<8x1xf32>
    %22 = vector.broadcast %20 : vector<1x1xf32> to vector<8x1xf32>
    %23 = arith.addf %21, %22 : vector<8x1xf32>
    %c0_20 = arith.constant 0 : index
    %c0_21 = arith.constant 0 : index
    %24 = vector.load %arg10[%c0_20, %c0_21] : memref<8x1xf32, #tpu.memory_space<vmem>>, vector<8x1xf32>
    tpu.vector_store %arg10[%c0_20, %c0_21], %23 {strides = array<i32>} : memref<8x1xf32, #tpu.memory_space<vmem>>, vector<8x1xf32>,
    return
  }
  func.func @transform_0(%arg0: i32) -> (i32, i32) {
    %c0_i32 = arith.constant 0 : i32
    %c0_i32_0 = arith.constant 0 : i32
    return %arg0, %c0_i32 : i32, i32
  }
  func.func @transform_1(%arg0: i32) -> (i32, i32) {
    %c0_i32 = arith.constant 0 : i32
    %c0_i32_0 = arith.constant 0 : i32
    %c0_i32_1 = arith.constant 0 : i32
    return %c0_i32, %c0_i32_0 : i32, i32
  }
  func.func @transform_2(%arg0: i32) -> (i32, i32) {
    %c0_i32 = arith.constant 0 : i32
    %c0_i32_0 = arith.constant 0 : i32
    %c0_i32_1 = arith.constant 0 : i32
    return %c0_i32, %c0_i32_0 : i32, i32
  }
  func.func @transform_3(%arg0: i32) -> (i32, i32) {
    %c0_i32 = arith.constant 0 : i32
    %c0_i32_0 = arith.constant 0 : i32
    %c0_i32_1 = arith.constant 0 : i32
    return %c0_i32, %c0_i32_0 : i32, i32
  }
  func.func @transform_4(%arg0: i32) -> (i32, i32) {
    %c0_i32 = arith.constant 0 : i32
    %c0_i32_0 = arith.constant 0 : i32
    %c0_i32_1 = arith.constant 0 : i32
    return %c0_i32, %c0_i32_0 : i32, i32
  }
  func.func @transform_5(%arg0: i32) -> (i32, i32) {
    %c0_i32 = arith.constant 0 : i32
    %c0_i32_0 = arith.constant 0 : i32
    %c0_i32_1 = arith.constant 0 : i32
    return %c0_i32, %c0_i32_0 : i32, i32
  }
  func.func @transform_6(%arg0: i32) -> (i32, i32) {
    %c0_i32 = arith.constant 0 : i32
    %c0_i32_0 = arith.constant 0 : i32
    %c0_i32_1 = arith.constant 0 : i32
    return %c0_i32, %c0_i32_0 : i32, i32
  }
  func.func @transform_7(%arg0: i32) -> (i32, i32) {
    %c0_i32 = arith.constant 0 : i32
    %c0_i32_0 = arith.constant 0 : i32
    %c0_i32_1 = arith.constant 0 : i32
    return %c0_i32, %c0_i32_0 : i32, i32
  }
  func.func @transform_8(%arg0: i32) -> (i32, i32) {
    %c0_i32 = arith.constant 0 : i32
    %c0_i32_0 = arith.constant 0 : i32
    %c0_i32_1 = arith.constant 0 : i32
    return %c0_i32, %c0_i32_0 : i32, i32
  }
  func.func @transform_9(%arg0: i32) -> (i32, i32) {
    %c0_i32 = arith.constant 0 : i32
    %c0_i32_0 = arith.constant 0 : i32
    return %arg0, %c0_i32 : i32, i32
  }
}

</mosaic_0001>

<bundles_post_ra>
// kernel: tpu_custom_call.1
= control target key start
LH: loop header
LB: loop body
LE: loop exit
PB: predicated region body
PF: predicated region fallthrough
CT: control target
= control target key end

     0   :  { %s639_s0 = inlined_call_operand.vmem [shape: f32[8,3], index: 0, kind: input, shape index: {}]   ;;  %s640_s1 = inlined_call_operand.hbm [shape: f32[3,32], index: 1, kind: input, shape index: {}]   ;;  %s641_s2 = inlined_call_operand.vmem [shape: f32[1,32], index: 2, kind: input, shape index: {}]   ;;  %s642_s3 = inlined_call_operand.vmem [shape: f32[32,32], index: 3, kind: input, shape index: {}]   ;;  %s643_s4 = inlined_call_operand.vmem [shape: f32[1,32], index: 4, kind: input, shape index: {}]   ;;  %s644_s5 = inlined_call_operand.vmem [shape: f32[32,32], index: 5, kind: input, shape index: {}]   ;;  %s645_s6 = inlined_call_operand.vmem [shape: f32[1,32], index: 6, kind: input, shape index: {}]   ;;  %s646_s7 = inlined_call_operand.vmem [shape: f32[32,1], index: 7, kind: input, shape index: {}]   ;;  %s647_s8 = inlined_call_operand.<no memory space> [shape: f32[1,1], index: 8, kind: input, shape index: {}]   ;;  %s648_s9 = inlined_call_operand.vmem [shape: f32[8,1], index: 9, kind: output, shape index: {}]  }
   0x1   :  { %v14_v0 = vstv %s647_s8 }
   0x2   :  { %15 = vst [vmem:[#allocation2] sm:$0x1] %v14_v0 }
   0x3   :  { %16 = vsyncpa [#allocation4], 0  ;;  %s512_s11 = smov [#allocation3]   ;;  %s488_s15 = scalar_lea.hbm %s640_s1, 64 }
   0x4   :  { %s25_s12 = sshll.u32 %s512_s11, 4  ;;  %p489_p0 = scmp.ne.s32.totalorder %s640_s1, %s488_s15  ;;  %s26_s12 = int_to_ptr.vmem [resolvable:$true] %s25_s12 }
   0x5   :  { %p492_p1 = scmp.lt.u32.totalorder %s488_s15, %s640_s1 }
   0x7   :  { %p494_p2 = pnand %p492_p1, %p489_p0 }
   0x9   :  { %497 = shalt.err (!%p494_p2)
}
   0xa   :  { %s498_s8 = scalar_lea.vmem %s26_s12, 64  ;;  %p503_p4 = scmp.lt.s32.totalorder %s26_s12, %s26_s12 }
   0xb   :  { %p499_p3 = scmp.ne.s32.totalorder %s26_s12, %s498_s8  ;;  %p504_p5 = scmp.lt.s32.totalorder %s498_s8, %s498_s8 }
   0xd   :  { %p505_p6 = por %p504_p5, %p503_p4 }
   0xf   :  { %p506_p7 = pnand %p505_p6, %p499_p3 }
  0x11   :  { %509 = shalt.err (!%p506_p7)
}
  0x12   :  { %28 = dma.hbm_to_vmem [thread:$0]  %s640_s1, 64, %s26_s12, [#allocation4]  }
  0x13   :  { %510 = dma.done.wait [#allocation4], 64  }
  0x14   :  { %511 = vsyncadd [#allocation4], 4294967232  ;;  %v513_v1 = vmov 0.0   ;;  %vm514_vm0 = vmmov 0   ;;  %vm59_vm1 = vcmask 1042432   ;;  %vm55_vm2 = vcmask 23552  }
  0x15   :  { %422 = vmatprep.subr.mxu0 %v513_v1  ;;  %424 = vmatprep.mubr.msk.f32.mxu0 %vm514_vm0, %v513_v1  ;;  %v47_v2 = vld [vmem:[#allocation3] sm:$0x7]  ;;  %v135_v5 = vld [vmem:[%s642_s3 + $0x8] sm:$0xff]  ;;  %v136_v6 = vld [vmem:[%s642_s3 + $0x10] sm:$0xff]  ;;  %v515_v7 = vmov 0.0|0.0   ;;  %vm145_vm3 = vcmask 261120  }
  0x16   :  { %435 = vmatprep.mubr.msk.f32.mxu1 %vm514_vm0, %v513_v1  ;;  %v46_v3 = vld [vmem:[%s639_s0] sm:$0xff]  ;;  %423 = vmatpush3.msk.msra.mxu0 %vm59_vm1, %v47_v2  ;;  %v137_v9 = vld [vmem:[%s642_s3 + $0x18] sm:$0xff]  ;;  %v221_v17 = vld [vmem:[%s644_s5 + $0x8] sm:$0xff]  ;;  %vm389_vm4 = vcmask 7168  }
  0x17   :  { %425 = vmatmul.mubr.msk.f32.vlgmr.msra.gmra.mrb[0].mxu0 %vm55_vm2, %v46_v3  ;;  %v134_v4 = vld [vmem:[%s642_s3] sm:$0xff]  ;;  %460 = vmatprep.subr.bf16.mxu1 %v515_v7  ;;  %v464_v10 = vpack.c.bf16 %v137_v9, %v136_v6  ;;  %v222_v18 = vld [vmem:[%s644_s5 + $0x10] sm:$0xff]  ;;  %v223_v20 = vld [vmem:[%s644_s5 + $0x18] sm:$0xff] }
  0x18   :  { %446 = vmatprep.mubr.msk.f32.mxu0 %vm514_vm0, %v513_v1  ;;  %v461_v8 = vpack.c.bf16 %v135_v5, %v134_v4  ;;  %466 = vmatprep.subr.bf16.mxu0 %v515_v7  ;;  %v396_v11 = vld [vmem:[%s641_s2] ss:$0 sm:$0xff]  ;;  %v470_v21 = vpack.c.bf16 %v223_v20, %v222_v18  ;;  %v306_v28 = vld [vmem:[%s646_s7 + $0x8] sm:$0xff]  ;;  %v307_v29 = vld [vmem:[%s646_s7 + $0x10] sm:$0xff] }
  0x19   :  { %v220_v16 = vld [vmem:[%s644_s5] sm:$0xff]  ;;  %v308_v31 = vld [vmem:[%s646_s7 + $0x18] sm:$0xff] }
  0x1a   :  { %462 = vmatpush3.bf16.msra.mxu1 %v461_v8  ;;  %v467_v19 = vpack.c.bf16 %v221_v17, %v220_v16  ;;  %v399_v22 = vld [vmem:[%s643_s4] ss:$0 sm:$0xff]  ;;  %v476_v32 = vpack.c.bf16 %v308_v31, %v307_v29 }
  0x1b   :  { %463 = vmatprep.subr.bf16.mxu1 %v515_v7  ;;  %v305_v27 = vld [vmem:[%s646_s7] sm:$0xff] }
  0x1c   :  { %468 = vmatpush3.bf16.msra.mxu0 %v467_v19  ;;  %v473_v30 = vpack.c.bf16 %v306_v28, %v305_v27  ;;  %v401_v33 = vld [vmem:[%s645_s6] ss:$0 sm:$0xff] }
  0x1d   :  { %469 = vmatprep.subr.bf16.mxu0 %v515_v7  ;;  %v403_v38 = vld [vmem:[#allocation2] ss:$0 sm:$0xff] }
  0x1e   :  { %465 = vmatpush3.bf16.msra.mxu1 %v464_v10 }
  0x1f   :  { %472 = vmatprep.subr.bf16.mxu1 %v515_v7 }
  0x20   :  { %471 = vmatpush3.bf16.msra.mxu0 %v470_v21 }
  0xea   :  { %v129_v12 = vpop.f32.mrb[0].mxu0 }
  0xeb   :  { %v130_v13 = vadd.f32 %v396_v11, %v129_v12  ;;  %v426_v14 = vpop.f32.mrb[1].mxu0 }
  0xed   :  { %482 = vtanh.f32 %v130_v13 }
  0xf7   :  { %v483_v15 = vpop.eup %482 }
  0xf8   :  { %436 = vmatmul.mubr.msk.f32.vlgmr.msra.gmra.mrb[0].mxu1 %vm145_vm3, %v483_v15 }
  0xf9   :  { %457 = vmatprep.mubr.msk.f32.mxu1 %vm514_vm0, %v513_v1  ;;  %474 = vmatpush3.bf16.msra.mxu1 %v473_v30 }
  0xfa   :  { %475 = vmatprep.subr.bf16.mxu1 %v515_v7 }
  0xfd   :  { %477 = vmatpush3.bf16.msra.mxu1 %v476_v32 }
 0x1cb   :  { %v215_v23 = vpop.f32.mrb[0].mxu1 }
 0x1cc   :  { %v216_v24 = vadd.f32 %v399_v22, %v215_v23  ;;  %v437_v25 = vpop.f32.mrb[1].mxu1 }
 0x1ce   :  { %484 = vtanh.f32 %v216_v24 }
 0x1d8   :  { %v485_v26 = vpop.eup %484 }
 0x1d9   :  { %447 = vmatmul.mubr.msk.f32.vlgmr.msra.gmra.mrb[2].mxu0 %vm145_vm3, %v485_v26 }
 0x2ac   :  { %v300_v34 = vpop.f32.mrb[2].mxu0 }
 0x2ad   :  { %v301_v35 = vadd.f32 %v401_v33, %v300_v34  ;;  %v448_v36 = vpop.f32.mrb[3].mxu0 }
 0x2af   :  { %486 = vtanh.f32 %v301_v35 }
 0x2b9   :  { %v487_v37 = vpop.eup %486 }
 0x2ba   :  { %458 = vmatmul.mubr.msk.f32.vlgmr.msra.gmra.mrb[2].mxu1 %vm145_vm3, %v487_v37 }
 0x38d   :  { %v385_v39 = vpop.f32.mrb[2].mxu1 }
 0x38e   :  { %v386_v40 = vadd.f32 %v403_v38, %v385_v39  ;;  %v459_v41 = vpop.f32.mrb[3].mxu1 }
 0x390   :  { %390 = vst.msk [vmem:[%s648_s9] sm:$0xff] %vm389_vm4, %v386_v40 }
 0x391   :  { %395 = vsyncpa [#allocation4], 1 }

</bundles_post_ra>
